<compile_context>
chip_gen: v6e
topology: v6e:2x2x1
jax: 0.10.0
libtpu: 0.0.40
codegen_flags: <defaults>
</compile_context>

<pallas_src>
import functools
import numpy as np
import jax
import jax.numpy as jnp
from jax.experimental import pallas as pl
from jax.experimental.pallas import tpu as pltpu


def _round_up(x: int, m: int) -> int:
    return ((x + m - 1) // m) * m


def _accumulate(yp_ref, yt_ref, acc_ref, *, groups, lanes, rem=None):
    """Fold the (groups*8, lanes) block into the (3, 8, lanes) accumulator.

    Works one sublane-aligned (8, lanes) slab at a time so the f32 casts and the
    product never materialize tile-sized temporaries.  `rem` (traced scalar) is
    the number of valid rows in this block; None means the whole block is valid.
    """
    a_tp = jnp.zeros((8, lanes), jnp.float32)
    a_t = jnp.zeros((8, lanes), jnp.float32)
    a_p = jnp.zeros((8, lanes), jnp.float32)
    for k in range(groups):                       # static, sublane-aligned slices
        yp = yp_ref[8 * k:8 * (k + 1), :].astype(jnp.float32)
        yt = yt_ref[8 * k:8 * (k + 1), :].astype(jnp.float32)
        if rem is not None:
            row = jax.lax.broadcasted_iota(jnp.int32, (8, lanes), 0) + 8 * k
            valid = row < rem
            # select (not multiply) so stale / NaN garbage rows never propagate
            yp = jnp.where(valid, yp, 0.0)
            yt = jnp.where(valid, yt, 0.0)
        a_tp = a_tp + yt * yp
        a_t = a_t + yt
        a_p = a_p + yp
    acc_ref[0] += a_tp
    acc_ref[1] += a_t
    acc_ref[2] += a_p


def _f1_partial_kernel(yp_ref, yt_ref, acc_ref, *, n_rows, steps, tile, lanes):
    """acc rows: 0 = sum(yt*yp), 1 = sum(yt), 2 = sum(yp); each (8, lanes)."""
    c = pl.program_id(0)                 # batch split (parallel)
    i = pl.program_id(1)                 # reduction step (arbitrary, last)

    @pl.when(i == 0)
    def _init():
        acc_ref[...] = jnp.zeros_like(acc_ref)

    rem = n_rows - (c * steps + i) * tile       # valid rows in this block
    groups = tile // 8

    @pl.when(rem >= tile)                       # hot path: full block, no masking
    def _full():
        _accumulate(yp_ref, yt_ref, acc_ref, groups=groups, lanes=lanes)

    @pl.when(jnp.logical_and(rem > 0, rem < tile))   # cold path: ragged tail
    def _ragged():
        _accumulate(yp_ref, yt_ref, acc_ref, groups=groups, lanes=lanes, rem=rem)
    # rem <= 0 (block entirely past N; only possible when num_splits > 1): no-op.


def f1_loss_stats(y_pred: jax.Array, y_true: jax.Array, *,
                  tile_rows: int = 1024, num_splits: int = 1):
    """Returns (tp, tn, fp, fn), each float32 of shape (C,), with the same math
    as PyTorch F1_Loss.forward (sums over dim 0).

    num_splits: keep 1 on single-TensorCore chips (v5e/v6e); use 2 on dual-TC
    v7x to shard the batch across cores.
    """
    assert y_pred.shape == y_true.shape and y_pred.ndim == 2, \
        "expected one-hot / probability shaped (N, C) inputs"
    N, C = y_pred.shape

    # Lane density: for few-class problems pad C up to one full 128-lane vreg
    # (tiny one-time copy; zero columns add nothing and are sliced off below).
    lanes = C if C >= 128 else 128
    if lanes != C:
        pad = ((0, 0), (0, lanes - C))
        y_pred = jnp.pad(y_pred, pad)
        y_true = jnp.pad(y_true, pad)

    # ---- tiling -------------------------------------------------------------
    num_splits = max(1, min(int(num_splits), pl.cdiv(N, 8)))
    itm = np.dtype(y_pred.dtype).itemsize + np.dtype(y_true.dtype).itemsize
    # Only the two double-buffered input blocks scale with the tile; in-kernel
    # f32 temporaries are (8, lanes) slabs (see _accumulate) and live in the
    # 12 MiB headroom between the 36 MiB budget and the 48 MiB scoped limit.
    bytes_per_row = 2 * itm * lanes
    budget = 36 * 1024 * 1024
    rows_budget = max(8, (budget // bytes_per_row) // 8 * 8)

    rows_per_split = _round_up(pl.cdiv(N, num_splits), 8)
    tile = max(8, min(_round_up(tile_rows, 8), rows_budget, rows_per_split))
    steps = pl.cdiv(rows_per_split, tile)
    # Re-balance so the (masked) last block is as full as possible.
    tile = max(8, min(tile, _round_up(pl.cdiv(rows_per_split, steps), 8)))

    last_block = pl.cdiv(N, tile) - 1   # clamp: never start a DMA past the array
    in_map = lambda c, i: (jnp.minimum(c * steps + i, last_block), 0)
    # (Optionally add pipeline_mode=pl.Buffered(3) if a trace shows exposed DMA.)
    in_spec = pl.BlockSpec((tile, lanes), in_map)
    out_spec = pl.BlockSpec((3, 8, lanes), lambda c, i: (c, 0, 0))  # resident/split

    kernel = functools.partial(_f1_partial_kernel,
                               n_rows=N, steps=steps, tile=tile, lanes=lanes)

    cost = pl.CostEstimate(
        flops=4 * N * lanes,
        transcendentals=0,
        bytes_accessed=N * lanes * itm + num_splits * 3 * 8 * lanes * 4,
    )

    partial = pl.pallas_call(
        kernel,
        out_shape=jax.ShapeDtypeStruct((num_splits * 3, 8, lanes), jnp.float32),
        grid_spec=pltpu.PrefetchScalarGridSpec(
            num_scalar_prefetch=0,
            grid=(num_splits, steps),            # reduction axis last
            in_specs=[in_spec, in_spec],
            out_specs=out_spec,
        ),
        compiler_params=pltpu.CompilerParams(
            dimension_semantics=("parallel", "arbitrary"),
            vmem_limit_bytes=48 * 1024 * 1024,   # <= v7x's 64 MiB physical VMEM
        ),
        cost_estimate=cost,
    )(y_pred, y_true)

    # Tiny final reduce (splits + 8 sublanes) and algebraic derivation in XLA.
    sums = partial.reshape(num_splits, 3, 8, lanes).sum(axis=(0, 2))[:, :C]
    s_tp, s_t, s_p = sums[0], sums[1], sums[2]
    n_f = jnp.float32(N)
    tp = s_tp
    fp = s_p - s_tp
    fn = s_t - s_tp
    tn = n_f - s_t - s_p + s_tp
    # NOTE(v7x): if narrow-dtype inputs ever make this VALU-bound at 3.2 TB/s
    # HBM, move the s_t / s_p column sums onto the MXU (ones(8, tile) @ block).
    return tp, tn, fp, fn


if __name__ == "__main__":
    key = jax.random.PRNGKey(0)
    ks = jax.random.split(key, 6)

    def reference(yp, yt):
        yp = yp.astype(jnp.float32)
        yt = yt.astype(jnp.float32)
        tp = (yt * yp).sum(axis=0)
        tn = ((1 - yt) * (1 - yp)).sum(axis=0)
        fp = ((1 - yt) * yp).sum(axis=0)
        fn = (yt * (1 - yp)).sum(axis=0)
        return tp, tn, fp, fn

    def check(yp, yt, **kw):
        out = f1_loss_stats(yp, yt, **kw)
        jax.block_until_ready(out)
        for got, want in zip(out, reference(yp, yt)):
            assert got.shape == want.shape, (got.shape, want.shape)
            assert jnp.allclose(got, want, atol=1e-3), (got, want)

    # Case 1: tile-aligned batch, lane-dense classes (hot path only).
    N, C = 64, 128
    yp = jax.random.uniform(ks[0], (N, C), dtype=jnp.float32)            # probabilities
    yt = (jax.random.uniform(ks[1], (N, C)) > 0.5).astype(jnp.float32)   # one-hot-ish labels
    check(yp, yt)

    # Case 2: ragged batch + few classes (in-kernel tail mask + lane pad to 128,
    # multiple reduction steps).
    N2, C2 = 45, 40
    yp2 = jax.random.uniform(ks[2], (N2, C2), dtype=jnp.float32)
    yt2 = (jax.random.uniform(ks[3], (N2, C2)) > 0.5).astype(jnp.float32)
    check(yp2, yt2, tile_rows=32)

    # Case 3: bf16 inputs, two batch splits (dual-TC style grid), ragged tail and
    # a fully out-of-range (no-op) block on the second split.
    N3, C3 = 77, 128
    yp3 = jax.random.uniform(ks[4], (N3, C3), dtype=jnp.float32).astype(jnp.bfloat16)
    yt3 = (jax.random.uniform(ks[5], (N3, C3)) > 0.5).astype(jnp.bfloat16)
    check(yp3, yt3, tile_rows=16, num_splits=2)

    print("KERNEL_OK")
</pallas_src>

<mosaic_0001>
module attributes {stable_mosaic.version = 11 : i64} {
  func.func @_f1_partial_kernel(%arg0: i32, %arg1: i32, %arg2: memref<64x128xf32, #tpu.memory_space<vmem>>, %arg3: memref<64x128xf32, #tpu.memory_space<vmem>>, %arg4: memref<3x8x128xf32, #tpu.memory_space<vmem>>) attributes {dimension_semantics = [#tpu.dimension_semantics<parallel>, #tpu.dimension_semantics<arbitrary>], iteration_bounds = array<i64: 1, 1>, scalar_prefetch = 0 : i64, scratch_operands = 0 : i64, tpu.core_type = #tpu.core_type<tc>, window_params = [{transform_indices = @transform_0, window_bounds = array<i64: 64, 128>}, {transform_indices = @transform_1, window_bounds = array<i64: 64, 128>}, {transform_indices = @transform_2, window_bounds = array<i64: 3, 8, 128>}]} {
    %c0_i32 = arith.constant 0 : i32
    %0 = arith.cmpi eq, %arg1, %c0_i32 : i32
    %1 = arith.extui %0 : i1 to i32
    %c0_i32_0 = arith.constant 0 : i32
    %2 = arith.cmpi ne, %1, %c0_i32_0 : i32
    scf.if %2 {
      %cst = arith.constant 0.000000e+00 : f32
      %15 = vector.broadcast %cst : f32 to vector<3x8x128xf32>
      %c0 = arith.constant 0 : index
      %c0_7 = arith.constant 0 : index
      %c0_8 = arith.constant 0 : index
      %16 = vector.load %arg4[%c0, %c0_7, %c0_8] : memref<3x8x128xf32, #tpu.memory_space<vmem>>, vector<3x8x128xf32>
      tpu.vector_store %arg4[%c0, %c0_7, %c0_8], %15 {strides = array<i32>} : memref<3x8x128xf32, #tpu.memory_space<vmem>>, vector<3x8x128xf32>,
    } else {
    }
    %c1_i32 = arith.constant 1 : i32
    %3 = arith.muli %arg0, %c1_i32 : i32
    %4 = arith.addi %3, %arg1 : i32
    %c64_i32 = arith.constant 64 : i32
    %5 = arith.muli %4, %c64_i32 : i32
    %c64_i32_1 = arith.constant 64 : i32
    %6 = arith.subi %c64_i32_1, %5 : i32
    %c64_i32_2 = arith.constant 64 : i32
    %7 = arith.cmpi sge, %6, %c64_i32_2 : i32
    %8 = arith.extui %7 : i1 to i32
    %c0_i32_3 = arith.constant 0 : i32
    %9 = arith.cmpi ne, %8, %c0_i32_3 : i32
    scf.if %9 {
      %cst = arith.constant 0.000000e+00 : f32
      %15 = vector.broadcast %cst : f32 to vector<8x128xf32>
      %cst_7 = arith.constant 0.000000e+00 : f32
      %16 = vector.broadcast %cst_7 : f32 to vector<8x128xf32>
      %cst_8 = arith.constant 0.000000e+00 : f32
      %17 = vector.broadcast %cst_8 : f32 to vector<8x128xf32>
      %c0 = arith.constant 0 : index
      %c0_9 = arith.constant 0 : index
      %18 = vector.load %arg2[%c0, %c0_9] : memref<64x128xf32, #tpu.memory_space<vmem>>, vector<8x128xf32>
      %c0_10 = arith.constant 0 : index
      %c0_11 = arith.constant 0 : index
      %19 = vector.load %arg3[%c0_10, %c0_11] : memref<64x128xf32, #tpu.memory_space<vmem>>, vector<8x128xf32>
      %20 = arith.mulf %19, %18 : vector<8x128xf32>
      %21 = arith.addf %15, %20 : vector<8x128xf32>
      %22 = arith.addf %16, %19 : vector<8x128xf32>
      %23 = arith.addf %17, %18 : vector<8x128xf32>
      %c8 = arith.constant 8 : index
      %c0_12 = arith.constant 0 : index
      %24 = vector.load %arg2[%c8, %c0_12] : memref<64x128xf32, #tpu.memory_space<vmem>>, vector<8x128xf32>
      %c8_13 = arith.constant 8 : index
      %c0_14 = arith.constant 0 : index
      %25 = vector.load %arg3[%c8_13, %c0_14] : memref<64x128xf32, #tpu.memory_space<vmem>>, vector<8x128xf32>
      %26 = arith.mulf %25, %24 : vector<8x128xf32>
      %27 = arith.addf %21, %26 : vector<8x128xf32>
      %28 = arith.addf %22, %25 : vector<8x128xf32>
      %29 = arith.addf %23, %24 : vector<8x128xf32>
      %c16 = arith.constant 16 : index
      %c0_15 = arith.constant 0 : index
      %30 = vector.load %arg2[%c16, %c0_15] : memref<64x128xf32, #tpu.memory_space<vmem>>, vector<8x128xf32>
      %c16_16 = arith.constant 16 : index
      %c0_17 = arith.constant 0 : index
      %31 = vector.load %arg3[%c16_16, %c0_17] : memref<64x128xf32, #tpu.memory_space<vmem>>, vector<8x128xf32>
      %32 = arith.mulf %31, %30 : vector<8x128xf32>
      %33 = arith.addf %27, %32 : vector<8x128xf32>
      %34 = arith.addf %28, %31 : vector<8x128xf32>
      %35 = arith.addf %29, %30 : vector<8x128xf32>
      %c24 = arith.constant 24 : index
      %c0_18 = arith.constant 0 : index
      %36 = vector.load %arg2[%c24, %c0_18] : memref<64x128xf32, #tpu.memory_space<vmem>>, vector<8x128xf32>
      %c24_19 = arith.constant 24 : index
      %c0_20 = arith.constant 0 : index
      %37 = vector.load %arg3[%c24_19, %c0_20] : memref<64x128xf32, #tpu.memory_space<vmem>>, vector<8x128xf32>
      %38 = arith.mulf %37, %36 : vector<8x128xf32>
      %39 = arith.addf %33, %38 : vector<8x128xf32>
      %40 = arith.addf %34, %37 : vector<8x128xf32>
      %41 = arith.addf %35, %36 : vector<8x128xf32>
      %c32 = arith.constant 32 : index
      %c0_21 = arith.constant 0 : index
      %42 = vector.load %arg2[%c32, %c0_21] : memref<64x128xf32, #tpu.memory_space<vmem>>, vector<8x128xf32>
      %c32_22 = arith.constant 32 : index
      %c0_23 = arith.constant 0 : index
      %43 = vector.load %arg3[%c32_22, %c0_23] : memref<64x128xf32, #tpu.memory_space<vmem>>, vector<8x128xf32>
      %44 = arith.mulf %43, %42 : vector<8x128xf32>
      %45 = arith.addf %39, %44 : vector<8x128xf32>
      %46 = arith.addf %40, %43 : vector<8x128xf32>
      %47 = arith.addf %41, %42 : vector<8x128xf32>
      %c40 = arith.constant 40 : index
      %c0_24 = arith.constant 0 : index
      %48 = vector.load %arg2[%c40, %c0_24] : memref<64x128xf32, #tpu.memory_space<vmem>>, vector<8x128xf32>
      %c40_25 = arith.constant 40 : index
      %c0_26 = arith.constant 0 : index
      %49 = vector.load %arg3[%c40_25, %c0_26] : memref<64x128xf32, #tpu.memory_space<vmem>>, vector<8x128xf32>
      %50 = arith.mulf %49, %48 : vector<8x128xf32>
      %51 = arith.addf %45, %50 : vector<8x128xf32>
      %52 = arith.addf %46, %49 : vector<8x128xf32>
      %53 = arith.addf %47, %48 : vector<8x128xf32>
      %c48 = arith.constant 48 : index
      %c0_27 = arith.constant 0 : index
      %54 = vector.load %arg2[%c48, %c0_27] : memref<64x128xf32, #tpu.memory_space<vmem>>, vector<8x128xf32>
      %c48_28 = arith.constant 48 : index
      %c0_29 = arith.constant 0 : index
      %55 = vector.load %arg3[%c48_28, %c0_29] : memref<64x128xf32, #tpu.memory_space<vmem>>, vector<8x128xf32>
      %56 = arith.mulf %55, %54 : vector<8x128xf32>
      %57 = arith.addf %51, %56 : vector<8x128xf32>
      %58 = arith.addf %52, %55 : vector<8x128xf32>
      %59 = arith.addf %53, %54 : vector<8x128xf32>
      %c56 = arith.constant 56 : index
      %c0_30 = arith.constant 0 : index
      %60 = vector.load %arg2[%c56, %c0_30] : memref<64x128xf32, #tpu.memory_space<vmem>>, vector<8x128xf32>
      %c56_31 = arith.constant 56 : index
      %c0_32 = arith.constant 0 : index
      %61 = vector.load %arg3[%c56_31, %c0_32] : memref<64x128xf32, #tpu.memory_space<vmem>>, vector<8x128xf32>
      %62 = arith.mulf %61, %60 : vector<8x128xf32>
      %63 = arith.addf %57, %62 : vector<8x128xf32>
      %64 = arith.addf %58, %61 : vector<8x128xf32>
      %65 = arith.addf %59, %60 : vector<8x128xf32>
      %c0_33 = arith.constant 0 : index
      %c0_34 = arith.constant 0 : index
      %c0_35 = arith.constant 0 : index
      %66 = vector.load %arg4[%c0_33, %c0_34, %c0_35] : memref<3x8x128xf32, #tpu.memory_space<vmem>>, vector<1x8x128xf32>
      %67 = vector.shape_cast %66 : vector<1x8x128xf32> to vector<8x128xf32>
      %68 = arith.addf %67, %63 : vector<8x128xf32>
      %c0_36 = arith.constant 0 : index
      %c0_37 = arith.constant 0 : index
      %c0_38 = arith.constant 0 : index
      %69 = vector.load %arg4[%c0_36, %c0_37, %c0_38] : memref<3x8x128xf32, #tpu.memory_space<vmem>>, vector<1x8x128xf32>
      %70 = vector.shape_cast %69 : vector<1x8x128xf32> to vector<8x128xf32>
      %71 = vector.shape_cast %68 : vector<8x128xf32> to vector<1x8x128xf32>
      tpu.vector_store %arg4[%c0_36, %c0_37, %c0_38], %71 {strides = array<i32>} : memref<3x8x128xf32, #tpu.memory_space<vmem>>, vector<1x8x128xf32>,
      %c1 = arith.constant 1 : index
      %c0_39 = arith.constant 0 : index
      %c0_40 = arith.constant 0 : index
      %72 = vector.load %arg4[%c1, %c0_39, %c0_40] : memref<3x8x128xf32, #tpu.memory_space<vmem>>, vector<1x8x128xf32>
      %73 = vector.shape_cast %72 : vector<1x8x128xf32> to vector<8x128xf32>
      %74 = arith.addf %73, %64 : vector<8x128xf32>
      %c1_41 = arith.constant 1 : index
      %c0_42 = arith.constant 0 : index
      %c0_43 = arith.constant 0 : index
      %75 = vector.load %arg4[%c1_41, %c0_42, %c0_43] : memref<3x8x128xf32, #tpu.memory_space<vmem>>, vector<1x8x128xf32>
      %76 = vector.shape_cast %75 : vector<1x8x128xf32> to vector<8x128xf32>
      %77 = vector.shape_cast %74 : vector<8x128xf32> to vector<1x8x128xf32>
      tpu.vector_store %arg4[%c1_41, %c0_42, %c0_43], %77 {strides = array<i32>} : memref<3x8x128xf32, #tpu.memory_space<vmem>>, vector<1x8x128xf32>,
      %c2 = arith.constant 2 : index
      %c0_44 = arith.constant 0 : index
      %c0_45 = arith.constant 0 : index
      %78 = vector.load %arg4[%c2, %c0_44, %c0_45] : memref<3x8x128xf32, #tpu.memory_space<vmem>>, vector<1x8x128xf32>
      %79 = vector.shape_cast %78 : vector<1x8x128xf32> to vector<8x128xf32>
      %80 = arith.addf %79, %65 : vector<8x128xf32>
      %c2_46 = arith.constant 2 : index
      %c0_47 = arith.constant 0 : index
      %c0_48 = arith.constant 0 : index
      %81 = vector.load %arg4[%c2_46, %c0_47, %c0_48] : memref<3x8x128xf32, #tpu.memory_space<vmem>>, vector<1x8x128xf32>
      %82 = vector.shape_cast %81 : vector<1x8x128xf32> to vector<8x128xf32>
      %83 = vector.shape_cast %80 : vector<8x128xf32> to vector<1x8x128xf32>
      tpu.vector_store %arg4[%c2_46, %c0_47, %c0_48], %83 {strides = array<i32>} : memref<3x8x128xf32, #tpu.memory_space<vmem>>, vector<1x8x128xf32>,
    } else {
    }
    %c0_i32_4 = arith.constant 0 : i32
    %10 = arith.cmpi sgt, %6, %c0_i32_4 : i32
    %c64_i32_5 = arith.constant 64 : i32
    %11 = arith.cmpi slt, %6, %c64_i32_5 : i32
    %12 = arith.andi %10, %11 : i1
    %13 = arith.extui %12 : i1 to i32
    %c0_i32_6 = arith.constant 0 : i32
    %14 = arith.cmpi ne, %13, %c0_i32_6 : i32
    scf.if %14 {
      %cst = arith.constant 0.000000e+00 : f32
      %15 = vector.broadcast %cst : f32 to vector<8x128xf32>
      %cst_7 = arith.constant 0.000000e+00 : f32
      %16 = vector.broadcast %cst_7 : f32 to vector<8x128xf32>
      %cst_8 = arith.constant 0.000000e+00 : f32
      %17 = vector.broadcast %cst_8 : f32 to vector<8x128xf32>
      %c0 = arith.constant 0 : index
      %c0_9 = arith.constant 0 : index
      %18 = vector.load %arg2[%c0, %c0_9] : memref<64x128xf32, #tpu.memory_space<vmem>>, vector<8x128xf32>
      %c0_10 = arith.constant 0 : index
      %c0_11 = arith.constant 0 : index
      %19 = vector.load %arg3[%c0_10, %c0_11] : memref<64x128xf32, #tpu.memory_space<vmem>>, vector<8x128xf32>
      %20 = tpu.iota {dimensions = array<i32: 0>} : vector<8x128xi32>
      %c0_i32_12 = arith.constant 0 : i32
      %21 = vector.broadcast %c0_i32_12 : i32 to vector<8x128xi32>
      %22 = arith.addi %20, %21 : vector<8x128xi32>
      %23 = vector.broadcast %6 : i32 to vector<8x128xi32>
      %24 = arith.cmpi slt, %22, %23 : vector<8x128xi32>
      %cst_13 = arith.constant 0.000000e+00 : f32
      %25 = vector.broadcast %cst_13 : f32 to vector<8x128xf32>
      %26 = arith.select %24, %18, %25 : vector<8x128xi1>, vector<8x128xf32>
      %cst_14 = arith.constant 0.000000e+00 : f32
      %27 = vector.broadcast %cst_14 : f32 to vector<8x128xf32>
      %28 = arith.select %24, %19, %27 : vector<8x128xi1>, vector<8x128xf32>
      %29 = arith.mulf %28, %26 : vector<8x128xf32>
      %30 = arith.addf %15, %29 : vector<8x128xf32>
      %31 = arith.addf %16, %28 : vector<8x128xf32>
      %32 = arith.addf %17, %26 : vector<8x128xf32>
      %c8 = arith.constant 8 : index
      %c0_15 = arith.constant 0 : index
      %33 = vector.load %arg2[%c8, %c0_15] : memref<64x128xf32, #tpu.memory_space<vmem>>, vector<8x128xf32>
      %c8_16 = arith.constant 8 : index
      %c0_17 = arith.constant 0 : index
      %34 = vector.load %arg3[%c8_16, %c0_17] : memref<64x128xf32, #tpu.memory_space<vmem>>, vector<8x128xf32>
      %35 = tpu.iota {dimensions = array<i32: 0>} : vector<8x128xi32>
      %c8_i32 = arith.constant 8 : i32
      %36 = vector.broadcast %c8_i32 : i32 to vector<8x128xi32>
      %37 = arith.addi %35, %36 : vector<8x128xi32>
      %38 = vector.broadcast %6 : i32 to vector<8x128xi32>
      %39 = arith.cmpi slt, %37, %38 : vector<8x128xi32>
      %cst_18 = arith.constant 0.000000e+00 : f32
      %40 = vector.broadcast %cst_18 : f32 to vector<8x128xf32>
      %41 = arith.select %39, %33, %40 : vector<8x128xi1>, vector<8x128xf32>
      %cst_19 = arith.constant 0.000000e+00 : f32
      %42 = vector.broadcast %cst_19 : f32 to vector<8x128xf32>
      %43 = arith.select %39, %34, %42 : vector<8x128xi1>, vector<8x128xf32>
      %44 = arith.mulf %43, %41 : vector<8x128xf32>
      %45 = arith.addf %30, %44 : vector<8x128xf32>
      %46 = arith.addf %31, %43 : vector<8x128xf32>
      %47 = arith.addf %32, %41 : vector<8x128xf32>
      %c16 = arith.constant 16 : index
      %c0_20 = arith.constant 0 : index
      %48 = vector.load %arg2[%c16, %c0_20] : memref<64x128xf32, #tpu.memory_space<vmem>>, vector<8x128xf32>
      %c16_21 = arith.constant 16 : index
      %c0_22 = arith.constant 0 : index
      %49 = vector.load %arg3[%c16_21, %c0_22] : memref<64x128xf32, #tpu.memory_space<vmem>>, vector<8x128xf32>
      %50 = tpu.iota {dimensions = array<i32: 0>} : vector<8x128xi32>
      %c16_i32 = arith.constant 16 : i32
      %51 = vector.broadcast %c16_i32 : i32 to vector<8x128xi32>
      %52 = arith.addi %50, %51 : vector<8x128xi32>
      %53 = vector.broadcast %6 : i32 to vector<8x128xi32>
      %54 = arith.cmpi slt, %52, %53 : vector<8x128xi32>
      %cst_23 = arith.constant 0.000000e+00 : f32
      %55 = vector.broadcast %cst_23 : f32 to vector<8x128xf32>
      %56 = arith.select %54, %48, %55 : vector<8x128xi1>, vector<8x128xf32>
      %cst_24 = arith.constant 0.000000e+00 : f32
      %57 = vector.broadcast %cst_24 : f32 to vector<8x128xf32>
      %58 = arith.select %54, %49, %57 : vector<8x128xi1>, vector<8x128xf32>
      %59 = arith.mulf %58, %56 : vector<8x128xf32>
      %60 = arith.addf %45, %59 : vector<8x128xf32>
      %61 = arith.addf %46, %58 : vector<8x128xf32>
      %62 = arith.addf %47, %56 : vector<8x128xf32>
      %c24 = arith.constant 24 : index
      %c0_25 = arith.constant 0 : index
      %63 = vector.load %arg2[%c24, %c0_25] : memref<64x128xf32, #tpu.memory_space<vmem>>, vector<8x128xf32>
      %c24_26 = arith.constant 24 : index
      %c0_27 = arith.constant 0 : index
      %64 = vector.load %arg3[%c24_26, %c0_27] : memref<64x128xf32, #tpu.memory_space<vmem>>, vector<8x128xf32>
      %65 = tpu.iota {dimensions = array<i32: 0>} : vector<8x128xi32>
      %c24_i32 = arith.constant 24 : i32
      %66 = vector.broadcast %c24_i32 : i32 to vector<8x128xi32>
      %67 = arith.addi %65, %66 : vector<8x128xi32>
      %68 = vector.broadcast %6 : i32 to vector<8x128xi32>
      %69 = arith.cmpi slt, %67, %68 : vector<8x128xi32>
      %cst_28 = arith.constant 0.000000e+00 : f32
      %70 = vector.broadcast %cst_28 : f32 to vector<8x128xf32>
      %71 = arith.select %69, %63, %70 : vector<8x128xi1>, vector<8x128xf32>
      %cst_29 = arith.constant 0.000000e+00 : f32
      %72 = vector.broadcast %cst_29 : f32 to vector<8x128xf32>
      %73 = arith.select %69, %64, %72 : vector<8x128xi1>, vector<8x128xf32>
      %74 = arith.mulf %73, %71 : vector<8x128xf32>
      %75 = arith.addf %60, %74 : vector<8x128xf32>
      %76 = arith.addf %61, %73 : vector<8x128xf32>
      %77 = arith.addf %62, %71 : vector<8x128xf32>
      %c32 = arith.constant 32 : index
      %c0_30 = arith.constant 0 : index
      %78 = vector.load %arg2[%c32, %c0_30] : memref<64x128xf32, #tpu.memory_space<vmem>>, vector<8x128xf32>
      %c32_31 = arith.constant 32 : index
      %c0_32 = arith.constant 0 : index
      %79 = vector.load %arg3[%c32_31, %c0_32] : memref<64x128xf32, #tpu.memory_space<vmem>>, vector<8x128xf32>
      %80 = tpu.iota {dimensions = array<i32: 0>} : vector<8x128xi32>
      %c32_i32 = arith.constant 32 : i32
      %81 = vector.broadcast %c32_i32 : i32 to vector<8x128xi32>
      %82 = arith.addi %80, %81 : vector<8x128xi32>
      %83 = vector.broadcast %6 : i32 to vector<8x128xi32>
      %84 = arith.cmpi slt, %82, %83 : vector<8x128xi32>
      %cst_33 = arith.constant 0.000000e+00 : f32
      %85 = vector.broadcast %cst_33 : f32 to vector<8x128xf32>
      %86 = arith.select %84, %78, %85 : vector<8x128xi1>, vector<8x128xf32>
      %cst_34 = arith.constant 0.000000e+00 : f32
      %87 = vector.broadcast %cst_34 : f32 to vector<8x128xf32>
      %88 = arith.select %84, %79, %87 : vector<8x128xi1>, vector<8x128xf32>
      %89 = arith.mulf %88, %86 : vector<8x128xf32>
      %90 = arith.addf %75, %89 : vector<8x128xf32>
      %91 = arith.addf %76, %88 : vector<8x128xf32>
      %92 = arith.addf %77, %86 : vector<8x128xf32>
      %c40 = arith.constant 40 : index
      %c0_35 = arith.constant 0 : index
      %93 = vector.load %arg2[%c40, %c0_35] : memref<64x128xf32, #tpu.memory_space<vmem>>, vector<8x128xf32>
      %c40_36 = arith.constant 40 : index
      %c0_37 = arith.constant 0 : index
      %94 = vector.load %arg3[%c40_36, %c0_37] : memref<64x128xf32, #tpu.memory_space<vmem>>, vector<8x128xf32>
      %95 = tpu.iota {dimensions = array<i32: 0>} : vector<8x128xi32>
      %c40_i32 = arith.constant 40 : i32
      %96 = vector.broadcast %c40_i32 : i32 to vector<8x128xi32>
      %97 = arith.addi %95, %96 : vector<8x128xi32>
      %98 = vector.broadcast %6 : i32 to vector<8x128xi32>
      %99 = arith.cmpi slt, %97, %98 : vector<8x128xi32>
      %cst_38 = arith.constant 0.000000e+00 : f32
      %100 = vector.broadcast %cst_38 : f32 to vector<8x128xf32>
      %101 = arith.select %99, %93, %100 : vector<8x128xi1>, vector<8x128xf32>
      %cst_39 = arith.constant 0.000000e+00 : f32
      %102 = vector.broadcast %cst_39 : f32 to vector<8x128xf32>
      %103 = arith.select %99, %94, %102 : vector<8x128xi1>, vector<8x128xf32>
      %104 = arith.mulf %103, %101 : vector<8x128xf32>
      %105 = arith.addf %90, %104 : vector<8x128xf32>
      %106 = arith.addf %91, %103 : vector<8x128xf32>
      %107 = arith.addf %92, %101 : vector<8x128xf32>
      %c48 = arith.constant 48 : index
      %c0_40 = arith.constant 0 : index
      %108 = vector.load %arg2[%c48, %c0_40] : memref<64x128xf32, #tpu.memory_space<vmem>>, vector<8x128xf32>
      %c48_41 = arith.constant 48 : index
      %c0_42 = arith.constant 0 : index
      %109 = vector.load %arg3[%c48_41, %c0_42] : memref<64x128xf32, #tpu.memory_space<vmem>>, vector<8x128xf32>
      %110 = tpu.iota {dimensions = array<i32: 0>} : vector<8x128xi32>
      %c48_i32 = arith.constant 48 : i32
      %111 = vector.broadcast %c48_i32 : i32 to vector<8x128xi32>
      %112 = arith.addi %110, %111 : vector<8x128xi32>
      %113 = vector.broadcast %6 : i32 to vector<8x128xi32>
      %114 = arith.cmpi slt, %112, %113 : vector<8x128xi32>
      %cst_43 = arith.constant 0.000000e+00 : f32
      %115 = vector.broadcast %cst_43 : f32 to vector<8x128xf32>
      %116 = arith.select %114, %108, %115 : vector<8x128xi1>, vector<8x128xf32>
      %cst_44 = arith.constant 0.000000e+00 : f32
      %117 = vector.broadcast %cst_44 : f32 to vector<8x128xf32>
      %118 = arith.select %114, %109, %117 : vector<8x128xi1>, vector<8x128xf32>
      %119 = arith.mulf %118, %116 : vector<8x128xf32>
      %120 = arith.addf %105, %119 : vector<8x128xf32>
      %121 = arith.addf %106, %118 : vector<8x128xf32>
      %122 = arith.addf %107, %116 : vector<8x128xf32>
      %c56 = arith.constant 56 : index
      %c0_45 = arith.constant 0 : index
      %123 = vector.load %arg2[%c56, %c0_45] : memref<64x128xf32, #tpu.memory_space<vmem>>, vector<8x128xf32>
      %c56_46 = arith.constant 56 : index
      %c0_47 = arith.constant 0 : index
      %124 = vector.load %arg3[%c56_46, %c0_47] : memref<64x128xf32, #tpu.memory_space<vmem>>, vector<8x128xf32>
      %125 = tpu.iota {dimensions = array<i32: 0>} : vector<8x128xi32>
      %c56_i32 = arith.constant 56 : i32
      %126 = vector.broadcast %c56_i32 : i32 to vector<8x128xi32>
      %127 = arith.addi %125, %126 : vector<8x128xi32>
      %128 = vector.broadcast %6 : i32 to vector<8x128xi32>
      %129 = arith.cmpi slt, %127, %128 : vector<8x128xi32>
      %cst_48 = arith.constant 0.000000e+00 : f32
      %130 = vector.broadcast %cst_48 : f32 to vector<8x128xf32>
      %131 = arith.select %129, %123, %130 : vector<8x128xi1>, vector<8x128xf32>
      %cst_49 = arith.constant 0.000000e+00 : f32
      %132 = vector.broadcast %cst_49 : f32 to vector<8x128xf32>
      %133 = arith.select %129, %124, %132 : vector<8x128xi1>, vector<8x128xf32>
      %134 = arith.mulf %133, %131 : vector<8x128xf32>
      %135 = arith.addf %120, %134 : vector<8x128xf32>
      %136 = arith.addf %121, %133 : vector<8x128xf32>
      %137 = arith.addf %122, %131 : vector<8x128xf32>
      %c0_50 = arith.constant 0 : index
      %c0_51 = arith.constant 0 : index
      %c0_52 = arith.constant 0 : index
      %138 = vector.load %arg4[%c0_50, %c0_51, %c0_52] : memref<3x8x128xf32, #tpu.memory_space<vmem>>, vector<1x8x128xf32>
      %139 = vector.shape_cast %138 : vector<1x8x128xf32> to vector<8x128xf32>
      %140 = arith.addf %139, %135 : vector<8x128xf32>
      %c0_53 = arith.constant 0 : index
      %c0_54 = arith.constant 0 : index
      %c0_55 = arith.constant 0 : index
      %141 = vector.load %arg4[%c0_53, %c0_54, %c0_55] : memref<3x8x128xf32, #tpu.memory_space<vmem>>, vector<1x8x128xf32>
      %142 = vector.shape_cast %141 : vector<1x8x128xf32> to vector<8x128xf32>
      %143 = vector.shape_cast %140 : vector<8x128xf32> to vector<1x8x128xf32>
      tpu.vector_store %arg4[%c0_53, %c0_54, %c0_55], %143 {strides = array<i32>} : memref<3x8x128xf32, #tpu.memory_space<vmem>>, vector<1x8x128xf32>,
      %c1 = arith.constant 1 : index
      %c0_56 = arith.constant 0 : index
      %c0_57 = arith.constant 0 : index
      %144 = vector.load %arg4[%c1, %c0_56, %c0_57] : memref<3x8x128xf32, #tpu.memory_space<vmem>>, vector<1x8x128xf32>
      %145 = vector.shape_cast %144 : vector<1x8x128xf32> to vector<8x128xf32>
      %146 = arith.addf %145, %136 : vector<8x128xf32>
      %c1_58 = arith.constant 1 : index
      %c0_59 = arith.constant 0 : index
      %c0_60 = arith.constant 0 : index
      %147 = vector.load %arg4[%c1_58, %c0_59, %c0_60] : memref<3x8x128xf32, #tpu.memory_space<vmem>>, vector<1x8x128xf32>
      %148 = vector.shape_cast %147 : vector<1x8x128xf32> to vector<8x128xf32>
      %149 = vector.shape_cast %146 : vector<8x128xf32> to vector<1x8x128xf32>
      tpu.vector_store %arg4[%c1_58, %c0_59, %c0_60], %149 {strides = array<i32>} : memref<3x8x128xf32, #tpu.memory_space<vmem>>, vector<1x8x128xf32>,
      %c2 = arith.constant 2 : index
      %c0_61 = arith.constant 0 : index
      %c0_62 = arith.constant 0 : index
      %150 = vector.load %arg4[%c2, %c0_61, %c0_62] : memref<3x8x128xf32, #tpu.memory_space<vmem>>, vector<1x8x128xf32>
      %151 = vector.shape_cast %150 : vector<1x8x128xf32> to vector<8x128xf32>
      %152 = arith.addf %151, %137 : vector<8x128xf32>
      %c2_63 = arith.constant 2 : index
      %c0_64 = arith.constant 0 : index
      %c0_65 = arith.constant 0 : index
      %153 = vector.load %arg4[%c2_63, %c0_64, %c0_65] : memref<3x8x128xf32, #tpu.memory_space<vmem>>, vector<1x8x128xf32>
      %154 = vector.shape_cast %153 : vector<1x8x128xf32> to vector<8x128xf32>
      %155 = vector.shape_cast %152 : vector<8x128xf32> to vector<1x8x128xf32>
      tpu.vector_store %arg4[%c2_63, %c0_64, %c0_65], %155 {strides = array<i32>} : memref<3x8x128xf32, #tpu.memory_space<vmem>>, vector<1x8x128xf32>,
    } else {
    }
    return
  }
  func.func @transform_0(%arg0: i32, %arg1: i32) -> (i32, i32) {
    %c1_i32 = arith.constant 1 : i32
    %0 = arith.muli %arg0, %c1_i32 : i32
    %1 = arith.addi %0, %arg1 : i32
    %c0_i32 = arith.constant 0 : i32
    %2 = arith.minsi %1, %c0_i32 : i32
    %c0_i32_0 = arith.constant 0 : i32
    %c0_i32_1 = arith.constant 0 : i32
    return %2, %c0_i32_0 : i32, i32
  }
  func.func @transform_1(%arg0: i32, %arg1: i32) -> (i32, i32) {
    %c1_i32 = arith.constant 1 : i32
    %0 = arith.muli %arg0, %c1_i32 : i32
    %1 = arith.addi %0, %arg1 : i32
    %c0_i32 = arith.constant 0 : i32
    %2 = arith.minsi %1, %c0_i32 : i32
    %c0_i32_0 = arith.constant 0 : i32
    %c0_i32_1 = arith.constant 0 : i32
    return %2, %c0_i32_0 : i32, i32
  }
  func.func @transform_2(%arg0: i32, %arg1: i32) -> (i32, i32, i32) {
    %c0_i32 = arith.constant 0 : i32
    %c0_i32_0 = arith.constant 0 : i32
    %c0_i32_1 = arith.constant 0 : i32
    return %arg0, %c0_i32, %c0_i32_0 : i32, i32, i32
  }
}

</mosaic_0001>

<bundles_post_ra>
// kernel: tpu_custom_call.1
= control target key start
LH: loop header
LB: loop body
LE: loop exit
PB: predicated region body
PF: predicated region fallthrough
CT: control target
= control target key end

     0   :  { %7 = vsyncpa [#allocation3], 0  ;;  %s364_s0 = inlined_call_operand.hbm [shape: f32[64,128], index: 0, kind: input, shape index: {}]   ;;  %s365_s1 = inlined_call_operand.hbm [shape: f32[64,128], index: 1, kind: input, shape index: {}]   ;;  %s366_s2 = inlined_call_operand.hbm [shape: f32[3,8,128], index: 2, kind: output, shape index: {}]  }
   0x1   :  { %8 = vsyncpa [#allocation6], 0 }
   0x2   :  { %9 = vsyncpa [#allocation4], 0  ;;  %s326_s9 = smov [#allocation2]  }
   0x3   :  { %s21_s10 = sshll.u32 %s326_s9, 4  ;;  %s22_s10 = int_to_ptr.vmem [resolvable:$true] %s21_s10 }
   0x4   :  { %s268_s11 = scalar_lea.vmem %s22_s10, 1024  ;;  %p273_p1 = scmp.lt.s32.totalorder %s22_s10, %s22_s10 }
   0x5   :  { %p269_p0 = scmp.ne.s32.totalorder %s22_s10, %s268_s11  ;;  %p274_p2 = scmp.lt.s32.totalorder %s268_s11, %s268_s11 }
   0x7   :  { %p275_p3 = por %p274_p2, %p273_p1 }
   0x9   :  { %p276_p4 = pnand %p275_p3, %p269_p0 }
   0xb   :  { %279 = shalt.err (!%p276_p4)
}
   0xc   :  { %s327_s12 = smov 128   ;;  %s328_s13 = smov 8  }
   0xd   :  { %27 = dma.hbm_to_vmem [thread:$0]  %s364_s0, 1024, %s22_s10, [#allocation3], %s327_s12, %s327_s12, %s328_s13  }
   0xe   :  { %s329_s16 = smov [#allocation5]  }
   0xf   :  { %s39_s17 = sshll.u32 %s329_s16, 4  ;;  %s40_s17 = int_to_ptr.vmem [resolvable:$true] %s39_s17 }
  0x10   :  { %s288_s18 = scalar_lea.vmem %s40_s17, 1024  ;;  %p293_p6 = scmp.lt.s32.totalorder %s40_s17, %s40_s17 }
  0x11   :  { %p289_p5 = scmp.ne.s32.totalorder %s40_s17, %s288_s18  ;;  %p294_p7 = scmp.lt.s32.totalorder %s288_s18, %s288_s18 }
  0x13   :  { %p295_p8 = por %p294_p7, %p293_p6 }
  0x15   :  { %p296_p9 = pnand %p295_p8, %p289_p5 }
  0x17   :  { %299 = shalt.err (!%p296_p9)
}
  0x18   :  { %45 = dma.hbm_to_vmem [thread:$0]  %s365_s1, 1024, %s40_s17, [#allocation6], %s327_s12, %s327_s12, %s328_s13  }
  0x19   :  { %320 = dma.done.wait [#allocation3], 1024  }
  0x1a   :  { %321 = vsyncadd [#allocation3], 4294966272 }
  0x1b   :  { %322 = dma.done.wait [#allocation6], 1024  }
  0x1c   :  { %323 = vsyncadd [#allocation6], 4294966272  ;;  %v74_v0 = vld [vmem:[#allocation2] sm:$0xff]  ;;  %v80_v2 = vld [vmem:[#allocation2 + $0x8] sm:$0xff]  ;;  %s330_s0 = smov [#allocation7]  }
  0x1d   :  { %v75_v1 = vld [vmem:[#allocation5] sm:$0xff]  ;;  %v81_v4 = vld [vmem:[#allocation5 + $0x8] sm:$0xff]  ;;  %v86_v5 = vld [vmem:[#allocation2 + $0x10] sm:$0xff]  ;;  %v85_v7 = vadd.f32 %v80_v2, %v74_v0  ;;  %s237_s1 = sshll.u32 %s330_s0, 4  ;;  %s238_s1 = int_to_ptr.vmem [resolvable:$true] %s237_s1 }
  0x1e   :  { %v76_v3 = vmul.f32 %v75_v1, %v74_v0  ;;  %v87_v6 = vld [vmem:[#allocation5 + $0x10] sm:$0xff]  ;;  %v82_v8 = vmul.f32 %v81_v4, %v80_v2  ;;  %v92_v10 = vld [vmem:[#allocation2 + $0x18] sm:$0xff]  ;;  %v84_v12 = vadd.f32 %v81_v4, %v75_v1  ;;  %v98_v13 = vld [vmem:[#allocation2 + $0x20] sm:$0xff]  ;;  %s300_s21 = scalar_lea.vmem %s238_s1, 384  ;;  %p305_p11 = scmp.lt.s32.totalorder %s238_s1, %s238_s1 }
  0x1f   :  { %v88_v9 = vmul.f32 %v87_v6, %v86_v5  ;;  %v93_v11 = vld [vmem:[#allocation5 + $0x18] sm:$0xff]  ;;  %v99_v14 = vld [vmem:[#allocation5 + $0x20] sm:$0xff]  ;;  %v91_v15 = vadd.f32 %v86_v5, %v85_v7  ;;  %v104_v19 = vld [vmem:[#allocation2 + $0x28] sm:$0xff]  ;;  %p301_p10 = scmp.ne.s32.totalorder %s238_s1, %s300_s21  ;;  %p306_p12 = scmp.lt.s32.totalorder %s300_s21, %s300_s21 }
  0x20   :  { %v83_v16 = vadd.f32 %v82_v8, %v76_v3  ;;  %v94_v17 = vmul.f32 %v93_v11, %v92_v10  ;;  %v90_v18 = vadd.f32 %v87_v6, %v84_v12  ;;  %v105_v20 = vld [vmem:[#allocation5 + $0x28] sm:$0xff]  ;;  %v100_v23 = vmul.f32 %v99_v14, %v98_v13  ;;  %v110_v25 = vld [vmem:[#allocation2 + $0x30] sm:$0xff]  ;;  %v116_v31 = vld [vmem:[#allocation2 + $0x38] sm:$0xff] }
  0x21   :  { %v97_v21 = vadd.f32 %v92_v10, %v91_v15  ;;  %v111_v26 = vld [vmem:[#allocation5 + $0x30] sm:$0xff]  ;;  %v106_v29 = vmul.f32 %v105_v20, %v104_v19  ;;  %v117_v32 = vld [vmem:[#allocation5 + $0x38] sm:$0xff]  ;;  %p307_p13 = por %p306_p12, %p305_p11 }
  0x22   :  { %v89_v22 = vadd.f32 %v88_v9, %v83_v16  ;;  %v96_v24 = vadd.f32 %v93_v11, %v90_v18  ;;  %v112_v35 = vmul.f32 %v111_v26, %v110_v25  ;;  %v118_v39 = vmul.f32 %v117_v32, %v116_v31 }
  0x23   :  { %v103_v27 = vadd.f32 %v98_v13, %v97_v21  ;;  %p308_p0 = pnand %p307_p13, %p301_p10 }
  0x24   :  { %v95_v28 = vadd.f32 %v94_v17, %v89_v22  ;;  %v102_v30 = vadd.f32 %v99_v14, %v96_v24 }
  0x25   :  { %v109_v33 = vadd.f32 %v104_v19, %v103_v27 }
  0x26   :  { %v101_v34 = vadd.f32 %v100_v23, %v95_v28  ;;  %v108_v36 = vadd.f32 %v105_v20, %v102_v30 }
  0x27   :  { %v115_v37 = vadd.f32 %v110_v25, %v109_v33 }
  0x28   :  { %v107_v38 = vadd.f32 %v106_v29, %v101_v34  ;;  %v114_v40 = vadd.f32 %v111_v26, %v108_v36 }
  0x29   :  { %v121_v41 = vadd.f32 %v116_v31, %v115_v37 }
  0x2a   :  { %v113_v42 = vadd.f32 %v112_v35, %v107_v38  ;;  %v120_v43 = vadd.f32 %v117_v32, %v114_v40 }
  0x2b   :  { %132 = vst [vmem:[#allocation7 + $0x10] sm:$0xff] %v121_v41 }
  0x2c   :  { %v119_v44 = vadd.f32 %v118_v39, %v113_v42  ;;  %128 = vst [vmem:[#allocation7 + $0x8] sm:$0xff] %v120_v43 }
  0x2e   :  { %124 = vst [vmem:[#allocation7] sm:$0xff] %v119_v44 }
  0x2f   :  { %311 = shalt.err (!%p308_p0)
}
  0x30   :  { %243 = dma.vmem_to_hbm [thread:$0]  %s238_s1, 384, %s366_s2, [#allocation4], %s327_s12, %s327_s12, %s328_s13  }
  0x31   :  { %324 = dma.done.wait [#allocation4], 384  }
  0x32   :  { %325 = vsyncadd [#allocation4], 4294966912 }
  0x33   :  { %247 = vsyncpa [#allocation3], 1 }
  0x34   :  { %248 = vsyncpa [#allocation6], 1 }
  0x35   :  { %249 = vsyncpa [#allocation4], 1 }

</bundles_post_ra>
